<compile_context>
chip_gen: v7x
topology: tpu7x:2x2x1
jax: 0.10.0
libtpu: 0.0.40
codegen_flags: <defaults>
</compile_context>

<pallas_src>
import functools

import jax
import jax.numpy as jnp
from jax.experimental import pallas as pl
from jax.experimental.pallas import tpu as pltpu


def _decoder_kernel(x_ref, w1_ref, b1_ref, w2_ref, b2_ref,
                    spk_rec_ref, mem_rec_ref, *, beta, num_steps):
    f32 = jnp.float32
    thr = f32(1.0)
    beta = f32(beta)

    batch = x_ref.shape[0]
    out = w2_ref.shape[1]

    # fc1 current is constant across steps (same x every step) -> one matmul.
    cur1 = jnp.dot(x_ref[...], w1_ref[...],
                   preferred_element_type=jnp.float32) + b1_ref[...]

    # --- Layer-1 Leaky recurrence: pure VPU, state stays in vregs. ---
    # reset at step t equals the spike emitted at step t-1 (threshold == 1.0).
    mem1 = jnp.zeros_like(cur1)
    spk1 = jnp.zeros_like(cur1)
    spk1_steps = []
    for _ in range(num_steps):
        mem1 = beta * mem1 + cur1 - spk1          # spk1 acts as the reset mask
        spk1 = (mem1 > thr).astype(f32)
        spk1_steps.append(spk1)

    # --- One batched fc2 matmul over all time steps. ---
    spk1_all = jnp.concatenate(spk1_steps, axis=0)        # (num_steps*B, H)
    b2 = b2_ref[...]                                       # hoisted, added once
    cur2_all = jnp.dot(spk1_all, w2_ref[...],
                       preferred_element_type=jnp.float32) + b2  # (T*B, O)

    # --- Layer-2 Leaky recurrence, state in vregs. ---
    mem2 = jnp.zeros((batch, out), f32)
    spk2 = jnp.zeros((batch, out), f32)
    spk2_chunks, mem2_chunks = [], []
    for step in range(num_steps):
        cur2 = cur2_all[step * batch:(step + 1) * batch, :]  # sublane-aligned
        mem2 = beta * mem2 + cur2 - spk2          # spk2 acts as the reset mask
        spk2 = (mem2 > thr).astype(f32)
        spk2_chunks.append(spk2)
        mem2_chunks.append(mem2)

    # Lane-dense writeback: one full (B, num_steps*O) store per output.
    spk_rec_ref[...] = jnp.concatenate(spk2_chunks, axis=1)
    mem_rec_ref[...] = jnp.concatenate(mem2_chunks, axis=1)


def decoder_forward(x, w1, b1, w2, b2, *, beta, num_steps):
    batch = x.shape[0]
    out = w2.shape[1]

    # Pad batch to a multiple of 8 sublanes so per-step chunks are vreg-aligned.
    pad_b = (-batch) % 8
    x_p = jnp.pad(x, ((0, pad_b), (0, 0))) if pad_b else x
    b_pad = x_p.shape[0]

    kernel = functools.partial(_decoder_kernel, beta=beta, num_steps=num_steps)
    vmem = pl.BlockSpec(memory_space=pltpu.MemorySpace.VMEM)

    # Gridless single-TC call; at these shapes the kernel is launch/DMA latency
    # bound. For large batches, add a batch grid with
    # dimension_semantics=("parallel",) to shard across TensorCores.
    spk_slab, mem_slab = pl.pallas_call(
        kernel,
        out_shape=(
            jax.ShapeDtypeStruct((b_pad, num_steps * out), jnp.float32),
            jax.ShapeDtypeStruct((b_pad, num_steps * out), jnp.float32),
        ),
        in_specs=[vmem] * 5,
        out_specs=(vmem, vmem),
    )(x_p, w1, b1, w2, b2)

    # (B_pad, T*O) -> (T, B, O), matching torch.stack(dim=0).
    def unslab(slab):
        slab = slab[:batch]
        return jnp.transpose(slab.reshape(batch, num_steps, out), (1, 0, 2))

    return unslab(spk_slab), unslab(mem_slab)


def decoder_reference(x, w1, b1, w2, b2, *, beta, num_steps):
    """Pure-JAX reference mirroring snnTorch Leaky forward (subtract reset)."""
    cur1 = x @ w1 + b1
    mem1 = jnp.zeros((x.shape[0], w1.shape[1]), jnp.float32)
    mem2 = jnp.zeros((x.shape[0], w2.shape[1]), jnp.float32)
    spk_rec, mem_rec = [], []
    for _ in range(num_steps):
        reset1 = (mem1 > 1.0).astype(jnp.float32)
        mem1 = beta * mem1 + cur1 - reset1
        spk1 = (mem1 > 1.0).astype(jnp.float32)
        cur2 = spk1 @ w2 + b2
        reset2 = (mem2 > 1.0).astype(jnp.float32)
        mem2 = beta * mem2 + cur2 - reset2
        spk2 = (mem2 > 1.0).astype(jnp.float32)
        spk_rec.append(spk2)
        mem_rec.append(mem2)
    return jnp.stack(spk_rec, 0), jnp.stack(mem_rec, 0)


if __name__ == "__main__":
    # Small shapes consistent with the module's forward.
    batch = 4
    input_size = 32
    hidden_size = 64
    output_size = 16
    beta = 0.9
    num_steps = 8

    key = jax.random.PRNGKey(0)
    kx, kw1, kb1, kw2, kb2 = jax.random.split(key, 5)

    x = jax.random.normal(kx, (batch, input_size), dtype=jnp.float32)

    # Deterministic PyTorch-Linear-like init: U(-1/sqrt(fan_in), 1/sqrt(fan_in)).
    lim1 = 1.0 / jnp.sqrt(jnp.float32(input_size))
    lim2 = 1.0 / jnp.sqrt(jnp.float32(hidden_size))
    w1 = jax.random.uniform(kw1, (input_size, hidden_size), jnp.float32, -lim1, lim1)
    b1 = jax.random.uniform(kb1, (1, hidden_size), jnp.float32, -lim1, lim1)
    w2 = jax.random.uniform(kw2, (hidden_size, output_size), jnp.float32, -lim2, lim2)
    b2 = jax.random.uniform(kb2, (1, output_size), jnp.float32, -lim2, lim2)

    spk_rec, mem_rec = decoder_forward(x, w1, b1, w2, b2,
                                       beta=beta, num_steps=num_steps)
    jax.block_until_ready((spk_rec, mem_rec))

    # Sanity check against the pure-JAX reference.
    spk_ref, mem_ref = decoder_reference(x, w1, b1, w2, b2,
                                         beta=beta, num_steps=num_steps)
    assert spk_rec.shape == (num_steps, batch, output_size)
    assert mem_rec.shape == (num_steps, batch, output_size)
    assert jnp.allclose(spk_rec, spk_ref, atol=1e-5)
    assert jnp.allclose(mem_rec, mem_ref, atol=1e-5)

    print("KERNEL_OK")
</pallas_src>

<mosaic_0001>
module attributes {stable_mosaic.version = 11 : i64} {
  func.func @_decoder_kernel(%arg0: memref<8x32xf32, #tpu.memory_space<vmem>>, %arg1: memref<32x64xf32, #tpu.memory_space<vmem>>, %arg2: memref<1x64xf32, #tpu.memory_space<vmem>>, %arg3: memref<64x16xf32, #tpu.memory_space<vmem>>, %arg4: memref<1x16xf32, #tpu.memory_space<vmem>>, %arg5: memref<8x128xf32, #tpu.memory_space<vmem>>, %arg6: memref<8x128xf32, #tpu.memory_space<vmem>>) attributes {dimension_semantics = [], scalar_prefetch = 0 : i64, scratch_operands = 0 : i64, tpu.core_type = #tpu.core_type<tc>} {
    %c0 = arith.constant 0 : index
    %c0_0 = arith.constant 0 : index
    %0 = vector.load %arg0[%c0, %c0_0] : memref<8x32xf32, #tpu.memory_space<vmem>>, vector<8x32xf32>
    %c0_1 = arith.constant 0 : index
    %c0_2 = arith.constant 0 : index
    %1 = vector.load %arg1[%c0_1, %c0_2] : memref<32x64xf32, #tpu.memory_space<vmem>>, vector<32x64xf32>
    %cst = arith.constant dense<0.000000e+00> : vector<8x64xf32>
    %2 = tpu.matmul %0, %1, %cst {dimension_numbers = #tpu.dot_dimension_numbers<[1], [0], [0], [1], [0, 0, 1, 1], [], []>} : vector<8x32xf32>, vector<32x64xf32>, vector<8x64xf32> -> vector<8x64xf32>
    %c0_3 = arith.constant 0 : index
    %c0_4 = arith.constant 0 : index
    %3 = vector.load %arg2[%c0_3, %c0_4] : memref<1x64xf32, #tpu.memory_space<vmem>>, vector<1x64xf32>
    %4 = vector.broadcast %3 : vector<1x64xf32> to vector<8x64xf32>
    %5 = arith.addf %2, %4 : vector<8x64xf32>
    %cst_5 = arith.constant 0.000000e+00 : f32
    %6 = vector.broadcast %cst_5 : f32 to vector<8x64xf32>
    %cst_6 = arith.constant 0.000000e+00 : f32
    %7 = vector.broadcast %cst_6 : f32 to vector<8x64xf32>
    %cst_7 = arith.constant 0.899999976 : f32
    %8 = vector.broadcast %cst_7 : f32 to vector<8x64xf32>
    %9 = arith.mulf %8, %6 : vector<8x64xf32>
    %10 = arith.addf %9, %5 : vector<8x64xf32>
    %11 = arith.subf %10, %7 : vector<8x64xf32>
    %cst_8 = arith.constant 1.000000e+00 : f32
    %12 = vector.broadcast %cst_8 : f32 to vector<8x64xf32>
    %13 = arith.cmpf ogt, %11, %12 : vector<8x64xf32>
    %14 = arith.extui %13 : vector<8x64xi1> to vector<8x64xi32>
    %15 = arith.sitofp %14 : vector<8x64xi32> to vector<8x64xf32>
    %cst_9 = arith.constant 0.899999976 : f32
    %16 = vector.broadcast %cst_9 : f32 to vector<8x64xf32>
    %17 = arith.mulf %16, %11 : vector<8x64xf32>
    %18 = arith.addf %17, %5 : vector<8x64xf32>
    %19 = arith.subf %18, %15 : vector<8x64xf32>
    %cst_10 = arith.constant 1.000000e+00 : f32
    %20 = vector.broadcast %cst_10 : f32 to vector<8x64xf32>
    %21 = arith.cmpf ogt, %19, %20 : vector<8x64xf32>
    %22 = arith.extui %21 : vector<8x64xi1> to vector<8x64xi32>
    %23 = arith.sitofp %22 : vector<8x64xi32> to vector<8x64xf32>
    %cst_11 = arith.constant 0.899999976 : f32
    %24 = vector.broadcast %cst_11 : f32 to vector<8x64xf32>
    %25 = arith.mulf %24, %19 : vector<8x64xf32>
    %26 = arith.addf %25, %5 : vector<8x64xf32>
    %27 = arith.subf %26, %23 : vector<8x64xf32>
    %cst_12 = arith.constant 1.000000e+00 : f32
    %28 = vector.broadcast %cst_12 : f32 to vector<8x64xf32>
    %29 = arith.cmpf ogt, %27, %28 : vector<8x64xf32>
    %30 = arith.extui %29 : vector<8x64xi1> to vector<8x64xi32>
    %31 = arith.sitofp %30 : vector<8x64xi32> to vector<8x64xf32>
    %cst_13 = arith.constant 0.899999976 : f32
    %32 = vector.broadcast %cst_13 : f32 to vector<8x64xf32>
    %33 = arith.mulf %32, %27 : vector<8x64xf32>
    %34 = arith.addf %33, %5 : vector<8x64xf32>
    %35 = arith.subf %34, %31 : vector<8x64xf32>
    %cst_14 = arith.constant 1.000000e+00 : f32
    %36 = vector.broadcast %cst_14 : f32 to vector<8x64xf32>
    %37 = arith.cmpf ogt, %35, %36 : vector<8x64xf32>
    %38 = arith.extui %37 : vector<8x64xi1> to vector<8x64xi32>
    %39 = arith.sitofp %38 : vector<8x64xi32> to vector<8x64xf32>
    %cst_15 = arith.constant 0.899999976 : f32
    %40 = vector.broadcast %cst_15 : f32 to vector<8x64xf32>
    %41 = arith.mulf %40, %35 : vector<8x64xf32>
    %42 = arith.addf %41, %5 : vector<8x64xf32>
    %43 = arith.subf %42, %39 : vector<8x64xf32>
    %cst_16 = arith.constant 1.000000e+00 : f32
    %44 = vector.broadcast %cst_16 : f32 to vector<8x64xf32>
    %45 = arith.cmpf ogt, %43, %44 : vector<8x64xf32>
    %46 = arith.extui %45 : vector<8x64xi1> to vector<8x64xi32>
    %47 = arith.sitofp %46 : vector<8x64xi32> to vector<8x64xf32>
    %cst_17 = arith.constant 0.899999976 : f32
    %48 = vector.broadcast %cst_17 : f32 to vector<8x64xf32>
    %49 = arith.mulf %48, %43 : vector<8x64xf32>
    %50 = arith.addf %49, %5 : vector<8x64xf32>
    %51 = arith.subf %50, %47 : vector<8x64xf32>
    %cst_18 = arith.constant 1.000000e+00 : f32
    %52 = vector.broadcast %cst_18 : f32 to vector<8x64xf32>
    %53 = arith.cmpf ogt, %51, %52 : vector<8x64xf32>
    %54 = arith.extui %53 : vector<8x64xi1> to vector<8x64xi32>
    %55 = arith.sitofp %54 : vector<8x64xi32> to vector<8x64xf32>
    %cst_19 = arith.constant 0.899999976 : f32
    %56 = vector.broadcast %cst_19 : f32 to vector<8x64xf32>
    %57 = arith.mulf %56, %51 : vector<8x64xf32>
    %58 = arith.addf %57, %5 : vector<8x64xf32>
    %59 = arith.subf %58, %55 : vector<8x64xf32>
    %cst_20 = arith.constant 1.000000e+00 : f32
    %60 = vector.broadcast %cst_20 : f32 to vector<8x64xf32>
    %61 = arith.cmpf ogt, %59, %60 : vector<8x64xf32>
    %62 = arith.extui %61 : vector<8x64xi1> to vector<8x64xi32>
    %63 = arith.sitofp %62 : vector<8x64xi32> to vector<8x64xf32>
    %cst_21 = arith.constant 0.899999976 : f32
    %64 = vector.broadcast %cst_21 : f32 to vector<8x64xf32>
    %65 = arith.mulf %64, %59 : vector<8x64xf32>
    %66 = arith.addf %65, %5 : vector<8x64xf32>
    %67 = arith.subf %66, %63 : vector<8x64xf32>
    %cst_22 = arith.constant 1.000000e+00 : f32
    %68 = vector.broadcast %cst_22 : f32 to vector<8x64xf32>
    %69 = arith.cmpf ogt, %67, %68 : vector<8x64xf32>
    %70 = arith.extui %69 : vector<8x64xi1> to vector<8x64xi32>
    %71 = arith.sitofp %70 : vector<8x64xi32> to vector<8x64xf32>
    %72 = tpu.concatenate %15, %23, %31, %39, %47, %55, %63, %71 in 0 : vector<8x64xf32>, vector<8x64xf32>, vector<8x64xf32>, vector<8x64xf32>, vector<8x64xf32>, vector<8x64xf32>, vector<8x64xf32>, vector<8x64xf32> -> vector<64x64xf32>
    %c0_23 = arith.constant 0 : index
    %c0_24 = arith.constant 0 : index
    %73 = vector.load %arg4[%c0_23, %c0_24] : memref<1x16xf32, #tpu.memory_space<vmem>>, vector<1x16xf32>
    %c0_25 = arith.constant 0 : index
    %c0_26 = arith.constant 0 : index
    %74 = vector.load %arg3[%c0_25, %c0_26] : memref<64x16xf32, #tpu.memory_space<vmem>>, vector<64x16xf32>
    %cst_27 = arith.constant dense<0.000000e+00> : vector<64x16xf32>
    %75 = tpu.matmul %72, %74, %cst_27 {dimension_numbers = #tpu.dot_dimension_numbers<[1], [0], [0], [1], [0, 0, 1, 1], [], []>} : vector<64x64xf32>, vector<64x16xf32>, vector<64x16xf32> -> vector<64x16xf32>
    %76 = vector.broadcast %73 : vector<1x16xf32> to vector<64x16xf32>
    %77 = arith.addf %75, %76 : vector<64x16xf32>
    %cst_28 = arith.constant 0.000000e+00 : f32
    %78 = vector.broadcast %cst_28 : f32 to vector<8x16xf32>
    %cst_29 = arith.constant 0.000000e+00 : f32
    %79 = vector.broadcast %cst_29 : f32 to vector<8x16xf32>
    %80 = vector.extract_strided_slice %77 {offsets = [0, 0], sizes = [8, 16], strides = [1, 1]} : vector<64x16xf32> to vector<8x16xf32>
    %cst_30 = arith.constant 0.899999976 : f32
    %81 = vector.broadcast %cst_30 : f32 to vector<8x16xf32>
    %82 = arith.mulf %81, %78 : vector<8x16xf32>
    %83 = arith.addf %82, %80 : vector<8x16xf32>
    %84 = arith.subf %83, %79 : vector<8x16xf32>
    %cst_31 = arith.constant 1.000000e+00 : f32
    %85 = vector.broadcast %cst_31 : f32 to vector<8x16xf32>
    %86 = arith.cmpf ogt, %84, %85 : vector<8x16xf32>
    %87 = arith.extui %86 : vector<8x16xi1> to vector<8x16xi32>
    %88 = arith.sitofp %87 : vector<8x16xi32> to vector<8x16xf32>
    %89 = vector.extract_strided_slice %77 {offsets = [8, 0], sizes = [8, 16], strides = [1, 1]} : vector<64x16xf32> to vector<8x16xf32>
    %cst_32 = arith.constant 0.899999976 : f32
    %90 = vector.broadcast %cst_32 : f32 to vector<8x16xf32>
    %91 = arith.mulf %90, %84 : vector<8x16xf32>
    %92 = arith.addf %91, %89 : vector<8x16xf32>
    %93 = arith.subf %92, %88 : vector<8x16xf32>
    %cst_33 = arith.constant 1.000000e+00 : f32
    %94 = vector.broadcast %cst_33 : f32 to vector<8x16xf32>
    %95 = arith.cmpf ogt, %93, %94 : vector<8x16xf32>
    %96 = arith.extui %95 : vector<8x16xi1> to vector<8x16xi32>
    %97 = arith.sitofp %96 : vector<8x16xi32> to vector<8x16xf32>
    %98 = vector.extract_strided_slice %77 {offsets = [16, 0], sizes = [8, 16], strides = [1, 1]} : vector<64x16xf32> to vector<8x16xf32>
    %cst_34 = arith.constant 0.899999976 : f32
    %99 = vector.broadcast %cst_34 : f32 to vector<8x16xf32>
    %100 = arith.mulf %99, %93 : vector<8x16xf32>
    %101 = arith.addf %100, %98 : vector<8x16xf32>
    %102 = arith.subf %101, %97 : vector<8x16xf32>
    %cst_35 = arith.constant 1.000000e+00 : f32
    %103 = vector.broadcast %cst_35 : f32 to vector<8x16xf32>
    %104 = arith.cmpf ogt, %102, %103 : vector<8x16xf32>
    %105 = arith.extui %104 : vector<8x16xi1> to vector<8x16xi32>
    %106 = arith.sitofp %105 : vector<8x16xi32> to vector<8x16xf32>
    %107 = vector.extract_strided_slice %77 {offsets = [24, 0], sizes = [8, 16], strides = [1, 1]} : vector<64x16xf32> to vector<8x16xf32>
    %cst_36 = arith.constant 0.899999976 : f32
    %108 = vector.broadcast %cst_36 : f32 to vector<8x16xf32>
    %109 = arith.mulf %108, %102 : vector<8x16xf32>
    %110 = arith.addf %109, %107 : vector<8x16xf32>
    %111 = arith.subf %110, %106 : vector<8x16xf32>
    %cst_37 = arith.constant 1.000000e+00 : f32
    %112 = vector.broadcast %cst_37 : f32 to vector<8x16xf32>
    %113 = arith.cmpf ogt, %111, %112 : vector<8x16xf32>
    %114 = arith.extui %113 : vector<8x16xi1> to vector<8x16xi32>
    %115 = arith.sitofp %114 : vector<8x16xi32> to vector<8x16xf32>
    %116 = vector.extract_strided_slice %77 {offsets = [32, 0], sizes = [8, 16], strides = [1, 1]} : vector<64x16xf32> to vector<8x16xf32>
    %cst_38 = arith.constant 0.899999976 : f32
    %117 = vector.broadcast %cst_38 : f32 to vector<8x16xf32>
    %118 = arith.mulf %117, %111 : vector<8x16xf32>
    %119 = arith.addf %118, %116 : vector<8x16xf32>
    %120 = arith.subf %119, %115 : vector<8x16xf32>
    %cst_39 = arith.constant 1.000000e+00 : f32
    %121 = vector.broadcast %cst_39 : f32 to vector<8x16xf32>
    %122 = arith.cmpf ogt, %120, %121 : vector<8x16xf32>
    %123 = arith.extui %122 : vector<8x16xi1> to vector<8x16xi32>
    %124 = arith.sitofp %123 : vector<8x16xi32> to vector<8x16xf32>
    %125 = vector.extract_strided_slice %77 {offsets = [40, 0], sizes = [8, 16], strides = [1, 1]} : vector<64x16xf32> to vector<8x16xf32>
    %cst_40 = arith.constant 0.899999976 : f32
    %126 = vector.broadcast %cst_40 : f32 to vector<8x16xf32>
    %127 = arith.mulf %126, %120 : vector<8x16xf32>
    %128 = arith.addf %127, %125 : vector<8x16xf32>
    %129 = arith.subf %128, %124 : vector<8x16xf32>
    %cst_41 = arith.constant 1.000000e+00 : f32
    %130 = vector.broadcast %cst_41 : f32 to vector<8x16xf32>
    %131 = arith.cmpf ogt, %129, %130 : vector<8x16xf32>
    %132 = arith.extui %131 : vector<8x16xi1> to vector<8x16xi32>
    %133 = arith.sitofp %132 : vector<8x16xi32> to vector<8x16xf32>
    %134 = vector.extract_strided_slice %77 {offsets = [48, 0], sizes = [8, 16], strides = [1, 1]} : vector<64x16xf32> to vector<8x16xf32>
    %cst_42 = arith.constant 0.899999976 : f32
    %135 = vector.broadcast %cst_42 : f32 to vector<8x16xf32>
    %136 = arith.mulf %135, %129 : vector<8x16xf32>
    %137 = arith.addf %136, %134 : vector<8x16xf32>
    %138 = arith.subf %137, %133 : vector<8x16xf32>
    %cst_43 = arith.constant 1.000000e+00 : f32
    %139 = vector.broadcast %cst_43 : f32 to vector<8x16xf32>
    %140 = arith.cmpf ogt, %138, %139 : vector<8x16xf32>
    %141 = arith.extui %140 : vector<8x16xi1> to vector<8x16xi32>
    %142 = arith.sitofp %141 : vector<8x16xi32> to vector<8x16xf32>
    %143 = vector.extract_strided_slice %77 {offsets = [56, 0], sizes = [8, 16], strides = [1, 1]} : vector<64x16xf32> to vector<8x16xf32>
    %cst_44 = arith.constant 0.899999976 : f32
    %144 = vector.broadcast %cst_44 : f32 to vector<8x16xf32>
    %145 = arith.mulf %144, %138 : vector<8x16xf32>
    %146 = arith.addf %145, %143 : vector<8x16xf32>
    %147 = arith.subf %146, %142 : vector<8x16xf32>
    %cst_45 = arith.constant 1.000000e+00 : f32
    %148 = vector.broadcast %cst_45 : f32 to vector<8x16xf32>
    %149 = arith.cmpf ogt, %147, %148 : vector<8x16xf32>
    %150 = arith.extui %149 : vector<8x16xi1> to vector<8x16xi32>
    %151 = arith.sitofp %150 : vector<8x16xi32> to vector<8x16xf32>
    %152 = tpu.concatenate %88, %97, %106, %115, %124, %133, %142, %151 in 1 : vector<8x16xf32>, vector<8x16xf32>, vector<8x16xf32>, vector<8x16xf32>, vector<8x16xf32>, vector<8x16xf32>, vector<8x16xf32>, vector<8x16xf32> -> vector<8x128xf32>
    %c0_46 = arith.constant 0 : index
    %c0_47 = arith.constant 0 : index
    %153 = vector.load %arg5[%c0_46, %c0_47] : memref<8x128xf32, #tpu.memory_space<vmem>>, vector<8x128xf32>
    tpu.vector_store %arg5[%c0_46, %c0_47], %152 {strides = array<i32>} : memref<8x128xf32, #tpu.memory_space<vmem>>, vector<8x128xf32>,
    %154 = tpu.concatenate %84, %93, %102, %111, %120, %129, %138, %147 in 1 : vector<8x16xf32>, vector<8x16xf32>, vector<8x16xf32>, vector<8x16xf32>, vector<8x16xf32>, vector<8x16xf32>, vector<8x16xf32>, vector<8x16xf32> -> vector<8x128xf32>
    %c0_48 = arith.constant 0 : index
    %c0_49 = arith.constant 0 : index
    %155 = vector.load %arg6[%c0_48, %c0_49] : memref<8x128xf32, #tpu.memory_space<vmem>>, vector<8x128xf32>
    tpu.vector_store %arg6[%c0_48, %c0_49], %154 {strides = array<i32>} : memref<8x128xf32, #tpu.memory_space<vmem>>, vector<8x128xf32>,
    return
  }
}

</mosaic_0001>

<bundles_post_ra>
// kernel: tpu_custom_call.1
= control target key start
LH: loop header
LB: loop body
LE: loop exit
PB: predicated region body
PF: predicated region fallthrough
CT: control target
= control target key end

     0   :  { %12 = vsyncpa [#allocation3], 0  ;;  %v629_v3 = vmov 0.0|0.0   ;;  %vm630_vm0 = vmmov 0   ;;  %v631_v6 = vmov 0.0   ;;  %s788_s0 = inlined_call_operand.vmem [shape: f32[8,32], index: 0, kind: input, shape index: {}]   ;;  %s789_s1 = inlined_call_operand.vmem [shape: f32[32,64], index: 1, kind: input, shape index: {}]   ;;  %s790_s2 = inlined_call_operand.vmem [shape: f32[1,64], index: 2, kind: input, shape index: {}]   ;;  %s791_s3 = inlined_call_operand.vmem [shape: f32[64,16], index: 3, kind: input, shape index: {}]   ;;  %s792_s4 = inlined_call_operand.vmem [shape: f32[1,16], index: 4, kind: input, shape index: {}]   ;;  %s793_s5 = inlined_call_operand.hbm [shape: f32[8,128], index: 5, kind: output, shape index: {0}]   ;;  %s794_s6 = inlined_call_operand.hbm [shape: f32[8,128], index: 6, kind: output, shape index: {1}]  }
   0x1   :  { %v25_v0 = vld [vmem:[%s789_s1] sm:$0xff]  ;;  %v26_v1 = vld [vmem:[%s789_s1 + $0x8] sm:$0xff]  ;;  %v27_v2 = vld [vmem:[%s789_s1 + $0x10] sm:$0xff]  ;;  %539 = vmatprep.subr.bf16.mxu0 %v629_v3  ;;  %508 = vmatprep.mubr.msk.f32.mxu0 %vm630_vm0, %v631_v6 }
   0x2   :  { %v540_v4 = vpack.c.bf16 %v26_v1, %v25_v0  ;;  %v28_v5 = vld [vmem:[%s789_s1 + $0x18] sm:$0xff]  ;;  %v157_v7 = vld [vmem:[%s791_s3] sm:$0xff]  ;;  %v158_v8 = vld [vmem:[%s791_s3 + $0x8] sm:$0xff] }
   0x3   :  { %v159_v9 = vld [vmem:[%s791_s3 + $0x10] sm:$0xff]  ;;  %v160_v10 = vld [vmem:[%s791_s3 + $0x18] sm:$0xff]  ;;  %v543_v11 = vpack.c.bf16 %v28_v5, %v27_v2  ;;  %v545_v12 = vpack.c.bf16 %v158_v8, %v157_v7 }
   0x4   :  { %541 = vmatpush3.bf16.msra.mxu0 %v540_v4 }
   0x5   :  { %13 = vsyncpa [#allocation5], 0  ;;  %542 = vmatprep.subr.bf16.mxu0 %v629_v3  ;;  %v549_v13 = vpack.c.bf16 %v160_v10, %v159_v9  ;;  %561 = vmatprep.subr.bf16.mxu1 %v545_v12  ;;  %v24_v14 = vld [vmem:[%s788_s0] sm:$0xff]  ;;  %vm36_vm1 = vcmask 261120   ;;  %v162_v16 = vld [vmem:[%s791_s3 + $0x28] sm:$0xff]  ;;  %vm171_vm2 = vcmask 523264  }
   0x6   :  { %565 = vmatpush3.bf16.msra.mxu1 %v545_v12  ;;  %v161_v15 = vld [vmem:[%s791_s3 + $0x20] sm:$0xff]  ;;  %v163_v18 = vld [vmem:[%s791_s3 + $0x30] sm:$0xff]  ;;  %v164_v19 = vld [vmem:[%s791_s3 + $0x38] sm:$0xff]  ;;  %s632_s23 = smov 16   ;;  %s634_s24 = smov 48  }
   0x7   :  { %562 = vmatprep.subr.bf16.mxu1 %v549_v13  ;;  %v553_v17 = vpack.c.bf16 %v162_v16, %v161_v15  ;;  %v557_v20 = vpack.c.bf16 %v164_v19, %v163_v18  ;;  %v452_v21 = vld [vmem:[%s790_s2] ss:$0 sm:$0xff]  ;;  %s635_s25 = smov 64   ;;  %s636_s26 = smov 80  }
   0x8   :  { %544 = vmatpush3.bf16.msra.mxu0 %v543_v11  ;;  %v462_v54 = vld [vmem:[%s792_s4] ss:$0 sm:$0xff]  ;;  %s633_s4 = smov 32   ;;  %s637_s27 = smov 96  }
   0x9   :  { %546 = vmatprep.subr.bf16.mxu0 %v545_v12  ;;  %s638_s28 = smov 112   ;;  %s639_s29 = smov [#allocation4]  }
   0xa   :  { %566 = vmatpush3.bf16.msra.mxu1 %v549_v13  ;;  %s440_s30 = sshll.u32 %s639_s29, 4  ;;  %s640_s7 = smov [#allocation2]   ;;  %s441_s30 = int_to_ptr.vmem [resolvable:$true] %s440_s30 }
   0xb   :  { %509 = vmatmul.mubr.msk.f32.vlgmr.msra.gmra.mrb[0].mxu0 %vm36_vm1, %v24_v14  ;;  %563 = vmatprep.subr.bf16.mxu1 %v553_v17  ;;  %s430_s8 = sshll.u32 %s640_s7, 4  ;;  %s581_s9 = scalar_lea.vmem %s441_s30, 128  ;;  %s431_s8 = int_to_ptr.vmem [resolvable:$true] %s430_s8 }
   0xc   :  { %548 = vmatpush3.bf16.msra.mxu0 %v545_v12  ;;  %p582_p0 = scmp.ne.s32.totalorder %s441_s30, %s581_s9  ;;  %p586_p1 = scmp.lt.s32.totalorder %s441_s30, %s441_s30 }
   0xd   :  { %550 = vmatprep.subr.bf16.mxu0 %v549_v13  ;;  %p587_p2 = scmp.lt.s32.totalorder %s581_s9, %s581_s9 }
   0xe   :  { %567 = vmatpush3.bf16.msra.mxu1 %v553_v17 }
   0xf   :  { %564 = vmatprep.subr.bf16.mxu1 %v557_v20  ;;  %p588_p3 = por %p587_p2, %p586_p1 }
  0x10   :  { %552 = vmatpush3.bf16.msra.mxu0 %v549_v13 }
  0x11   :  { %554 = vmatprep.subr.bf16.mxu0 %v553_v17  ;;  %p589_p4 = pnand %p588_p3, %p582_p0 }
  0x12   :  { %568 = vmatpush3.bf16.msra.mxu1 %v557_v20 }
  0x14   :  { %556 = vmatpush3.bf16.msra.mxu0 %v553_v17 }
  0x15   :  { %558 = vmatprep.subr.bf16.mxu0 %v557_v20 }
  0x18   :  { %560 = vmatpush3.bf16.msra.mxu0 %v557_v20 }
  0xde   :  { %v106_v22 = vpop.f32.mrb[0].mxu0 }
  0xdf   :  { %v107_v23 = vadd.f32 %v452_v21, %v106_v22  ;;  %v510_v24 = vpop.f32.mrb[1].mxu0 }
  0xe1   :  { %vm111_vm3 = vcmp.gt.f32.partialorder %v107_v23, 1.0  ;;  %v114_v25 = vmul.f32 0.9, %v107_v23 }
  0xe2   :  { %v454_v26 = vsel %vm111_vm3, 1.0, %v631_v6 }
  0xe3   :  { %v115_v27 = vadd.f32 %v114_v25, %v107_v23  ;;  %527 = vmatprep.mubr.msk.f32.mxu0 %vm171_vm2, %v454_v26 }
  0xe5   :  { %v116_v28 = vsub.f32 %v115_v27, %v454_v26 }
  0xe7   :  { %vm117_vm4 = vcmp.gt.f32.partialorder %v116_v28, 1.0  ;;  %v120_v29 = vmul.f32 0.9, %v116_v28 }
  0xe8   :  { %v455_v30 = vsel %vm117_vm4, 1.0, %v631_v6 }
  0xe9   :  { %528 = vmatmul.mubr.msk.f32.vlgmr.msra.gmra.mrb[2].mxu0 %vm171_vm2, %v455_v30  ;;  %v121_v31 = vadd.f32 %v120_v29, %v107_v23 }
  0xeb   :  { %v122_v32 = vsub.f32 %v121_v31, %v455_v30 }
  0xed   :  { %vm123_vm5 = vcmp.gt.f32.partialorder %v122_v32, 1.0  ;;  %v126_v33 = vmul.f32 0.9, %v122_v32 }
  0xee   :  { %v456_v34 = vsel %vm123_vm5, 1.0, %v631_v6  ;;  %vm375_vm5 = vcmask 130048  }
  0xef   :  { %v127_v35 = vadd.f32 %v126_v33, %v107_v23  ;;  %530 = vmatprep.mubr.msk.f32.mxu1 %vm171_vm2, %v456_v34 }
  0xf1   :  { %v128_v36 = vsub.f32 %v127_v35, %v456_v34 }
  0xf3   :  { %vm129_vm6 = vcmp.gt.f32.partialorder %v128_v36, 1.0  ;;  %v132_v37 = vmul.f32 0.9, %v128_v36 }
  0xf4   :  { %v457_v38 = vsel %vm129_vm6, 1.0, %v631_v6  ;;  %vm378_vm6 = vcmask 392192  }
  0xf5   :  { %v133_v39 = vadd.f32 %v132_v37, %v107_v23  ;;  %531 = vmatmul.mubr.msk.f32.vlgmr.msra.gmra.mrb[0].mxu1 %vm171_vm2, %v457_v38 }
  0xf7   :  { %v134_v40 = vsub.f32 %v133_v39, %v457_v38 }
  0xf9   :  { %v138_v41 = vmul.f32 0.9, %v134_v40  ;;  %vm135_vm7 = vcmp.gt.f32.partialorder %v134_v40, 1.0 }
  0xfa   :  { %v458_v42 = vsel %vm135_vm7, 1.0, %v631_v6  ;;  %vm381_vm7 = vcmask 654336  }
  0xfb   :  { %v139_v43 = vadd.f32 %v138_v41, %v107_v23  ;;  %533 = vmatprep.mubr.msk.f32.mxu1 %vm171_vm2, %v458_v42 }
  0xfd   :  { %v140_v44 = vsub.f32 %v139_v43, %v458_v42 }
  0xff   :  { %v144_v45 = vmul.f32 0.9, %v140_v44  ;;  %vm141_vm8 = vcmp.gt.f32.partialorder %v140_v44, 1.0 }
 0x100   :  { %v459_v46 = vsel %vm141_vm8, 1.0, %v631_v6  ;;  %vm383_vm8 = vcmask 785408  }
 0x101   :  { %v145_v47 = vadd.f32 %v144_v45, %v107_v23  ;;  %534 = vmatmul.mubr.msk.f32.gmra.mrb[2].mxu1 %vm171_vm2, %v459_v46 }
 0x103   :  { %v146_v48 = vsub.f32 %v145_v47, %v459_v46 }
 0x105   :  { %v150_v49 = vmul.f32 0.9, %v146_v48  ;;  %vm147_vm9 = vcmp.gt.f32.partialorder %v146_v48, 1.0 }
 0x106   :  { %v460_v50 = vsel %vm147_vm9, 1.0, %v631_v6  ;;  %vm385_vm9 = vcmask 916480  }
 0x107   :  { %v151_v51 = vadd.f32 %v150_v49, %v107_v23  ;;  %536 = vmatprep.mubr.msk.f32.mxu1 %vm171_vm2, %v460_v50 }
 0x109   :  { %v152_v52 = vsub.f32 %v151_v51, %v460_v50 }
 0x10b   :  { %vm153_vm10 = vcmp.gt.f32.partialorder %v152_v52, 1.0 }
 0x10c   :  { %v461_v53 = vsel %vm153_vm10, 1.0, %v631_v6 }
 0x10d   :  { %537 = vmatmul.mubr.msk.f32.gmra.mrb[4].mxu1 %vm171_vm2, %v461_v53 }
 0x1bc   :  { %v529_v55 = vpop.f32.mrb[2].mxu0 }
 0x1bd   :  { %v262_v56 = vpop.f32.mrb[3].mxu0  ;;  %v268_v58 = vadd.f32 %v529_v55, %v462_v54 }
 0x1be   :  { %v739_v57 = vadd.f32 %v462_v54, %v262_v56 }
 0x1c0   :  { %vm302_vm11 = vcmp.gt.f32.partialorder %v739_v57, 1.0  ;;  %v305_v59 = vmul.f32 0.9, %v739_v57 }
 0x1c1   :  { %v744_v61 = vsel %vm302_vm11, 1.0, %v631_v6 }
 0x1c2   :  { %v306_v60 = vadd.f32 %v305_v59, %v268_v58 }
 0x1c4   :  { %v307_v62 = vsub.f32 %v306_v60, %v744_v61 }
 0x1c6   :  { %389 = vrot.lane.b32.xlu0 %v307_v62, %s632_s23  ;;  %vm308_vm12 = vcmp.gt.f32.partialorder %v307_v62, 1.0  ;;  %v311_v3 = vmul.f32 0.9, %v307_v62 }
 0x1c7   :  { %v472_v1 = vsel %vm308_vm12, 1.0, %v631_v6 }
 0x1c8   :  { %v532_v63 = vpop.f32.mrb[0].mxu1 }
 0x1c9   :  { %v272_v0 = vpop.f32.mrb[1].mxu1  ;;  %v278_v7 = vadd.f32 %v532_v63, %v462_v54 }
 0x1ca   :  { %v273_v2 = vadd.f32 %v462_v54, %v272_v0  ;;  %348 = vrot.lane.b32.xlu0 %v472_v1, %s632_s23 }
 0x1cc   :  { %v312_v4 = vadd.f32 %v311_v3, %v273_v2 }
 0x1ce   :  { %v313_v5 = vsub.f32 %v312_v4, %v472_v1 }
 0x1d0   :  { %393 = vrot.lane.b32.xlu1 %v313_v5, %s633_s4  ;;  %vm314_vm13 = vcmp.gt.f32.partialorder %v313_v5, 1.0  ;;  %v317_v8 = vmul.f32 0.9, %v313_v5 }
 0x1d1   :  { %v473_v10 = vsel %vm314_vm13, 1.0, %v631_v6 }
 0x1d2   :  { %v318_v9 = vadd.f32 %v317_v8, %v278_v7 }
 0x1d4   :  { %v535_v11 = vpop.f32.mrb[2].mxu1  ;;  %352 = vrot.lane.b32.xlu1 %v473_v10, %s633_s4  ;;  %v319_v12 = vsub.f32 %v318_v9, %v473_v10 }
 0x1d5   :  { %v282_v13 = vpop.f32.mrb[3].mxu1  ;;  %v288_v19 = vadd.f32 %v535_v11, %v462_v54 }
 0x1d6   :  { %v283_v14 = vadd.f32 %v462_v54, %v282_v13  ;;  %v323_v15 = vmul.f32 0.9, %v319_v12  ;;  %vm320_vm14 = vcmp.gt.f32.partialorder %v319_v12, 1.0 }
 0x1d7   :  { %v474_v16 = vsel %vm320_vm14, 1.0, %v631_v6 }
 0x1d8   :  { %v324_v17 = vadd.f32 %v323_v15, %v283_v14  ;;  %397 = vrot.lane.b32.xlu1 %v319_v12, %s634_s24  ;;  %356 = vrot.lane.b32.xlu0 %v474_v16, %s634_s24 }
 0x1da   :  { %v325_v18 = vsub.f32 %v324_v17, %v474_v16 }
 0x1dc   :  { %401 = vrot.lane.b32.xlu1 %v325_v18, %s635_s25  ;;  %vm326_vm15 = vcmp.gt.f32.partialorder %v325_v18, 1.0  ;;  %v329_v20 = vmul.f32 0.9, %v325_v18 }
 0x1dd   :  { %v475_v21 = vsel %vm326_vm15, 1.0, %v631_v6 }
 0x1de   :  { %v330_v22 = vadd.f32 %v329_v20, %v288_v19  ;;  %360 = vrot.lane.b32.xlu0 %v475_v21, %s635_s25 }
 0x1e0   :  { %v331_v23 = vsub.f32 %v330_v22, %v475_v21  ;;  %v538_v24 = vpop.f32.mrb[4].mxu1 }
 0x1e1   :  { %v292_v25 = vpop.f32.mrb[5].mxu1  ;;  %v298_v31 = vadd.f32 %v538_v24, %v462_v54 }
 0x1e2   :  { %v293_v26 = vadd.f32 %v462_v54, %v292_v25  ;;  %v335_v27 = vmul.f32 0.9, %v331_v23  ;;  %405 = vrot.lane.b32.xlu1 %v331_v23, %s636_s26  ;;  %vm332_vm0 = vcmp.gt.f32.partialorder %v331_v23, 1.0 }
 0x1e3   :  { %v476_v28 = vsel %vm332_vm0, 1.0, %v631_v6 }
 0x1e4   :  { %v336_v29 = vadd.f32 %v335_v27, %v293_v26  ;;  %364 = vrot.lane.b32.xlu0 %v476_v28, %s636_s26 }
 0x1e6   :  { %v337_v30 = vsub.f32 %v336_v29, %v476_v28 }
 0x1e8   :  { %409 = vrot.lane.b32.xlu1 %v337_v30, %s637_s27  ;;  %vm338_vm3 = vcmp.gt.f32.partialorder %v337_v30, 1.0  ;;  %v341_v32 = vmul.f32 0.9, %v337_v30 }
 0x1e9   :  { %v477_v33 = vsel %vm338_vm3, 1.0, %v631_v6 }
 0x1ea   :  { %v342_v34 = vadd.f32 %v341_v32, %v298_v31  ;;  %368 = vrot.lane.b32.xlu0 %v477_v33, %s637_s27 }
 0x1ec   :  { %v343_v35 = vsub.f32 %v342_v34, %v477_v33 }
 0x1ee   :  { %413 = vrot.lane.b32.xlu1 %v343_v35, %s638_s28  ;;  %vm344_vm4 = vcmp.gt.f32.partialorder %v343_v35, 1.0 }
 0x1ef   :  { %v478_v36 = vsel %vm344_vm4, 1.0, %v631_v6 }
 0x1f0   :  { %372 = vrot.lane.b32.xlu0 %v478_v36, %s638_s28 }
 0x238   :  { %v390_v38 = vpop.permute.xlu0 %389 }
 0x239   :  { %v416_v47 = vsel %vm375_vm5, %v739_v57, %v390_v38 }
 0x23c   :  { %v349_v40 = vpop.permute.xlu0 %348 }
 0x23d   :  { %v376_v6 = vsel %vm375_vm5, %v744_v61, %v349_v40 }
 0x242   :  { %v394_v37 = vpop.permute.xlu1 %393 }
 0x243   :  { %v417_v48 = vsel %vm36_vm1, %v416_v47, %v394_v37 }
 0x246   :  { %v353_v39 = vpop.permute.xlu1 %352 }
 0x247   :  { %v377_v51 = vsel %vm36_vm1, %v376_v6, %v353_v39 }
 0x24a   :  { %v398_v41 = vpop.permute.xlu1 %397  ;;  %v357_v42 = vpop.permute.xlu0 %356 }
 0x24b   :  { %v418_v50 = vsel %vm378_vm6, %v417_v48, %v398_v41  ;;  %v379_v54 = vsel %vm378_vm6, %v377_v51, %v357_v42 }
 0x24e   :  { %v402_v43 = vpop.permute.xlu1 %401 }
 0x24f   :  { %v419_v52 = vsel %vm171_vm2, %v418_v50, %v402_v43 }
 0x250   :  { %v361_v44 = vpop.permute.xlu0 %360 }
 0x251   :  { %v380_v56 = vsel %vm171_vm2, %v379_v54, %v361_v44 }
 0x254   :  { %v406_v45 = vpop.permute.xlu1 %405 }
 0x255   :  { %v420_v55 = vsel %vm381_vm7, %v419_v52, %v406_v45 }
 0x256   :  { %v365_v46 = vpop.permute.xlu0 %364 }
 0x257   :  { %v382_v59 = vsel %vm381_vm7, %v380_v56, %v365_v46 }
 0x25a   :  { %v410_v49 = vpop.permute.xlu1 %409 }
 0x25b   :  { %v421_v57 = vsel %vm383_vm8, %v420_v55, %v410_v49 }
 0x25c   :  { %v369_v53 = vpop.permute.xlu0 %368 }
 0x25d   :  { %v384_v61 = vsel %vm383_vm8, %v382_v59, %v369_v53 }
 0x260   :  { %v414_v58 = vpop.permute.xlu1 %413 }
 0x261   :  { %v422_v60 = vsel %vm385_vm9, %v421_v57, %v414_v58 }
 0x262   :  { %423 = vst [vmem:[#allocation4] sm:$0xff] %v422_v60  ;;  %v373_v62 = vpop.permute.xlu0 %372 }
 0x263   :  { %v386_v63 = vsel %vm385_vm9, %v384_v61, %v373_v62 }
 0x264   :  { %592 = shalt.err (!%p589_p4)
}
 0x265   :  { %s593_s12 = scalar_lea.hbm %s794_s6, 128 }
 0x266   :  { %p594_p5 = scmp.ne.s32.totalorder %s794_s6, %s593_s12  ;;  %p597_p6 = scmp.lt.u32.totalorder %s593_s12, %s794_s6 }
 0x268   :  { %p599_p7 = pnand %p597_p6, %p594_p5 }
 0x26a   :  { %602 = shalt.err (!%p599_p7)
}
 0x26b   :  { %443 = dma.vmem_to_hbm [thread:$0]  %s441_s30, 128, %s794_s6, [#allocation5]   ;;  %387 = vst [vmem:[#allocation2] sm:$0xff] %v386_v63 }
 0x26c   :  { %s603_s0 = scalar_lea.vmem %s431_s8, 128  ;;  %p608_p9 = scmp.lt.s32.totalorder %s431_s8, %s431_s8 }
 0x26d   :  { %p604_p8 = scmp.ne.s32.totalorder %s431_s8, %s603_s0  ;;  %p609_p10 = scmp.lt.s32.totalorder %s603_s0, %s603_s0 }
 0x26f   :  { %p610_p11 = por %p609_p10, %p608_p9 }
 0x271   :  { %p611_p12 = pnand %p610_p11, %p604_p8 }
 0x273   :  { %614 = shalt.err (!%p611_p12)
}
 0x274   :  { %s615_s20 = scalar_lea.hbm %s793_s5, 128 }
 0x275   :  { %p616_p13 = scmp.ne.s32.totalorder %s793_s5, %s615_s20  ;;  %p619_p0 = scmp.lt.u32.totalorder %s615_s20, %s793_s5 }
 0x277   :  { %p621_p1 = pnand %p619_p0, %p616_p13 }
 0x279   :  { %624 = shalt.err (!%p621_p1)
}
 0x27a   :  { %433 = dma.vmem_to_hbm [thread:$0]  %s431_s8, 128, %s793_s5, [#allocation3]  }
 0x27b   :  { %625 = dma.done.wait [#allocation3], 128  }
 0x27c   :  { %626 = vsyncadd [#allocation3], 4294967168 }
 0x27d   :  { %627 = dma.done.wait [#allocation5], 128  }
 0x27e   :  { %628 = vsyncadd [#allocation5], 4294967168 }
 0x27f   :  { %450 = vsyncpa [#allocation3], 1 }
 0x280   :  { %451 = vsyncpa [#allocation5], 1 }

</bundles_post_ra>
